<compile_context>
chip_gen: v7x
topology: tpu7x:2x2x1
jax: 0.10.0
libtpu: 0.0.40
codegen_flags: <defaults>
</compile_context>

<pallas_src>
import jax
import jax.numpy as jnp
from jax.experimental import pallas as pl
from jax.experimental.pallas import tpu as pltpu


def _round_up(n, m):
    return ((n + m - 1) // m) * m


def lr_kernel(x_ref, w_ref, cb_ref, out_ref):
    # x_ref  : (TB, FL)  flattened batch tile of x, native (possibly narrow) dtype
    # w_ref  : (O, FL)   feature-replicated nn.Linear weight (f32, resident)
    # cb_ref : (O, 1)    combined bias = bias + F * linear_bias (resident)
    # out_ref: (O, TB)   lane-dense output slab (batch on the lane axis)
    xf = x_ref[...].astype(jnp.float32)                      # VPU cast, hidden under DMA
    lin = jnp.einsum("of,tf->ot", w_ref[...], xf,
                     preferred_element_type=jnp.float32)     # (O, TB) contraction over FL
    out_ref[...] = (lin + cb_ref[...]).astype(out_ref.dtype)


def lr_forward(x, w, b_lin, bias, *, tb_cap=8192, vmem_budget_bytes=12 << 20):
    """x: (B, F, L) any float/int-like dtype; w: (O, L); b_lin, bias: (O,).
    Returns (B, 1, O) float32 matching the PyTorch LR.forward semantics."""
    B, F, L = x.shape
    O = w.shape[0]
    FL = F * L

    # Free reshape (collapses contiguous trailing dims); no dtype cast of the big array.
    x2d = x.reshape(B, FL)
    # Feature-replicated weight and folded bias (tiny wrapper-side constants).
    w_rep = jnp.tile(w.astype(jnp.float32), (1, F))                         # (O, FL)
    cb = (bias.astype(jnp.float32) + F * b_lin.astype(jnp.float32)).reshape(O, 1)

    # --- batch-tile sizing ---------------------------------------------------
    itemsize = jnp.dtype(x2d.dtype).itemsize
    fl_lanes = _round_up(FL, 128)                 # lane-padded width of the x tile in VMEM
    # Double-buffered x tile must fit the VMEM budget (conservative for v7x's 64 MiB).
    max_tb = max(128, (vmem_budget_bytes // (2 * fl_lanes * itemsize)) // 128 * 128)
    # Prefer >= 2 grid steps so both v7x TensorCores get work (no effect on v5e/v6e).
    tb_two_cores = _round_up(pl.cdiv(B, 2), 128)
    TB = min(tb_cap, max_tb, tb_two_cores)
    TB = max(128, (TB // 128) * 128)              # lane-dense output blocks

    grid = (pl.cdiv(B, TB),)                      # ragged last block masked by Pallas

    out = pl.pallas_call(
        lr_kernel,
        out_shape=jax.ShapeDtypeStruct((O, B), jnp.float32),
        grid=grid,
        in_specs=[
            pl.BlockSpec((TB, FL), lambda b: (b, 0)),   # streamed batch tile of x
            pl.BlockSpec((O, FL), lambda b: (0, 0)),    # replicated weight, resident
            pl.BlockSpec((O, 1), lambda b: (0, 0)),     # combined bias, resident
        ],
        out_specs=pl.BlockSpec((O, TB), lambda b: (0, b)),  # lane-dense (O, TB) slab
        compiler_params=pltpu.CompilerParams(
            dimension_semantics=("parallel",),
            vmem_limit_bytes=32 * 1024 * 1024),
        cost_estimate=pl.CostEstimate(
            flops=2 * O * FL * B,
            bytes_accessed=B * FL * itemsize + O * B * 4 + O * FL * 4,
            transcendentals=0),
    )(x2d, w_rep, cb)

    # Layout plumbing back to the PyTorch output shape (B, 1, O); O is tiny so this is cheap.
    return out.T.reshape(B, 1, O)


if __name__ == "__main__":
    # Small shapes implied by the forward: latent_nums == feature_nums for nn.Linear.
    batch = 2
    feature_nums = 8
    latent_nums = feature_nums
    output_dim = 1

    key = jax.random.PRNGKey(0)
    kx, kw, kb = jax.random.split(key, 3)

    # Docstring says x is an Int tensor; small ints are exact in bf16, so store x narrow
    # (halves HBM traffic of this bandwidth-bound kernel). Cast to f32 happens in-kernel.
    x = jax.random.randint(kx, (batch, feature_nums, latent_nums), 0, 5).astype(jnp.bfloat16)

    # nn.Linear(feature_nums, output_dim) parameters.
    w = (jax.random.normal(kw, (output_dim, latent_nums)) * 0.1).astype(jnp.float32)
    b_lin = (jax.random.normal(kb, (output_dim,)) * 0.1).astype(jnp.float32)
    bias = jnp.zeros((output_dim,), jnp.float32)  # self.bias initialized to zeros

    out = lr_forward(x, w, b_lin, bias)
    out = jax.block_until_ready(out)

    # Pure-JAX reference of the exact PyTorch semantics (computed in f32).
    xf = x.astype(jnp.float32)
    ref = bias[None, :] + jnp.sum(xf @ w.T + b_lin, axis=1)  # (B, O)
    ref = ref[:, None, :]                                    # (B, 1, O)

    assert out.shape == (batch, 1, output_dim)
    assert jnp.allclose(out, ref, atol=1e-4, rtol=1e-4), (out, ref)
    print("KERNEL_OK")
</pallas_src>

<mosaic_0001>
module attributes {stable_mosaic.version = 11 : i64} {
  func.func @lr_kernel(%arg0: i32, %arg1: memref<128x64xbf16, #tpu.memory_space<vmem>>, %arg2: memref<1x64xf32, #tpu.memory_space<vmem>>, %arg3: memref<1x1xf32, #tpu.memory_space<vmem>>, %arg4: memref<1x128xf32, #tpu.memory_space<vmem>>) attributes {dimension_semantics = [#tpu.dimension_semantics<parallel>], iteration_bounds = array<i64: 1>, scalar_prefetch = 0 : i64, scratch_operands = 0 : i64, tpu.core_type = #tpu.core_type<tc>, window_params = [{transform_indices = @transform_0, window_bounds = array<i64: 128, 64>}, {pipeline_mode = #tpu.pipeline_mode<synchronous>, transform_indices = @transform_1, window_bounds = array<i64: 1, 64>}, {pipeline_mode = #tpu.pipeline_mode<synchronous>, transform_indices = @transform_2, window_bounds = array<i64: 1, 1>}, {transform_indices = @transform_3, window_bounds = array<i64: 1, 128>}]} {
    %c0 = arith.constant 0 : index
    %c0_0 = arith.constant 0 : index
    %0 = vector.load %arg1[%c0, %c0_0] : memref<128x64xbf16, #tpu.memory_space<vmem>>, vector<128x64xbf16>
    %1 = arith.extf %0 : vector<128x64xbf16> to vector<128x64xf32>
    %c0_1 = arith.constant 0 : index
    %c0_2 = arith.constant 0 : index
    %2 = vector.load %arg2[%c0_1, %c0_2] : memref<1x64xf32, #tpu.memory_space<vmem>>, vector<1x64xf32>
    "tpu.trace_start"() <{level = 10 : i32, message = "of,tf->ot"}> : () -> ()
    %cst = arith.constant dense<0.000000e+00> : vector<1x128xf32>
    %3 = tpu.matmul %2, %1, %cst {dimension_numbers = #tpu.dot_dimension_numbers<[1], [1], [0], [0], [0, 0, 1, 0], [], []>} : vector<1x64xf32>, vector<128x64xf32>, vector<1x128xf32> -> vector<1x128xf32>
    "tpu.trace_stop"() : () -> ()
    %c0_3 = arith.constant 0 : index
    %c0_4 = arith.constant 0 : index
    %4 = vector.load %arg3[%c0_3, %c0_4] : memref<1x1xf32, #tpu.memory_space<vmem>>, vector<1x1xf32>
    %5 = vector.broadcast %4 : vector<1x1xf32> to vector<1x128xf32>
    %6 = arith.addf %3, %5 : vector<1x128xf32>
    %c0_5 = arith.constant 0 : index
    %c0_6 = arith.constant 0 : index
    %7 = vector.load %arg4[%c0_5, %c0_6] : memref<1x128xf32, #tpu.memory_space<vmem>>, vector<1x128xf32>
    tpu.vector_store %arg4[%c0_5, %c0_6], %6 {strides = array<i32>} : memref<1x128xf32, #tpu.memory_space<vmem>>, vector<1x128xf32>,
    return
  }
  func.func @transform_0(%arg0: i32) -> (i32, i32) {
    %c0_i32 = arith.constant 0 : i32
    %c0_i32_0 = arith.constant 0 : i32
    return %arg0, %c0_i32 : i32, i32
  }
  func.func @transform_1(%arg0: i32) -> (i32, i32) {
    %c0_i32 = arith.constant 0 : i32
    %c0_i32_0 = arith.constant 0 : i32
    %c0_i32_1 = arith.constant 0 : i32
    return %c0_i32, %c0_i32_0 : i32, i32
  }
  func.func @transform_2(%arg0: i32) -> (i32, i32) {
    %c0_i32 = arith.constant 0 : i32
    %c0_i32_0 = arith.constant 0 : i32
    %c0_i32_1 = arith.constant 0 : i32
    return %c0_i32, %c0_i32_0 : i32, i32
  }
  func.func @transform_3(%arg0: i32) -> (i32, i32) {
    %c0_i32 = arith.constant 0 : i32
    %c0_i32_0 = arith.constant 0 : i32
    return %c0_i32, %arg0 : i32, i32
  }
}

</mosaic_0001>

<bundles_post_ra>
// kernel: tpu_custom_call.1
= control target key start
LH: loop header
LB: loop body
LE: loop exit
PB: predicated region body
PF: predicated region fallthrough
CT: control target
= control target key end

     0   :  { %s1050_s0 = inlined_call_operand.vmem [shape: bf16[2,64], index: 0, kind: input, shape index: {}]   ;;  %s1051_s1 = inlined_call_operand.vmem [shape: f32[1,64], index: 1, kind: input, shape index: {}]   ;;  %s1052_s2 = inlined_call_operand.<no memory space> [shape: f32[1,1], index: 2, kind: input, shape index: {}]   ;;  %s1053_s3 = inlined_call_operand.hbm [shape: f32[1,2], index: 3, kind: output, shape index: {}]  }
   0x1   :  { %v8_v0 = vstv %s1052_s2 }
   0x2   :  { %9 = vst [vmem:[#allocation2] sm:$0x1] %v8_v0 }
   0x3   :  { %v17_v1 = vld [vmem:[%s1050_s0] sm:$0x1]  ;;  %v18_v2 = vld [vmem:[%s1050_s0 + $0x1] sm:$0x1]  ;;  %v152_v3 = vlaneseq  ;;  %v745_v4 = vmov 0.0|0.0   ;;  %vm492_vm0 = vcmask 523264  }
   0x4   :  { %682 = vmatprep.subr.bf16.mxu0 %v745_v4  ;;  %v19_v5 = vld [vmem:[%s1050_s0 + $0x2] sm:$0x1]  ;;  %v20_v6 = vld [vmem:[%s1050_s0 + $0x3] sm:$0x1]  ;;  %v21_v7 = vld [vmem:[%s1050_s0 + $0x4] sm:$0x1]  ;;  %v81_v8 = vunpack.c.l.bf16 %v17_v1  ;;  %v82_v9 = vunpack.c.l.bf16 %v18_v2 }
   0x5   :  { %v22_v10 = vld [vmem:[%s1050_s0 + $0x5] sm:$0x1]  ;;  %v23_v11 = vld [vmem:[%s1050_s0 + $0x6] sm:$0x1]  ;;  %v24_v12 = vld [vmem:[%s1050_s0 + $0x7] sm:$0x1]  ;;  %v83_v13 = vunpack.c.l.bf16 %v19_v5  ;;  %v84_v14 = vunpack.c.l.bf16 %v20_v6  ;;  %v85_v15 = vunpack.c.l.bf16 %v21_v7 }
   0x6   :  { %v86_v16 = vunpack.c.l.bf16 %v22_v10  ;;  %v87_v17 = vunpack.c.l.bf16 %v23_v11  ;;  %v88_v18 = vunpack.c.l.bf16 %v24_v12  ;;  %v799_v19 = vshrl.u32 %v152_v3, 7  ;;  %v25_v20 = vld [vmem:[%s1050_s0 + $0x8] sm:$0x1]  ;;  %v26_v21 = vld [vmem:[%s1050_s0 + $0x9] sm:$0x1]  ;;  %vm862_vm1 = vmpackc.low %vm492_vm0, %vm492_vm0 }
   0x7   :  { %v220_v22 = vcombine.low %v81_v8, %v82_v9  ;;  %v221_v23 = vcombine.low %v83_v13, %v84_v14  ;;  %v27_v24 = vld [vmem:[%s1050_s0 + $0xa] sm:$0x1]  ;;  %v28_v25 = vld [vmem:[%s1050_s0 + $0xb] sm:$0x1]  ;;  %v89_v26 = vunpack.c.l.bf16 %v25_v20  ;;  %v746_v27 = vmov 1983009808  }
   0x8   :  { %v223_v28 = vunpack.c.l.s4 %v746_v27  ;;  %v237_v29 = vcombine.low %v85_v15, %v86_v16  ;;  %v238_v30 = vcombine.low %v87_v17, %v88_v18  ;;  %v29_v31 = vld [vmem:[%s1050_s0 + $0xc] sm:$0x1]  ;;  %v30_v32 = vld [vmem:[%s1050_s0 + $0xd] sm:$0x1]  ;;  %v31_v33 = vld [vmem:[%s1050_s0 + $0xe] sm:$0x1]  ;;  %v90_v34 = vunpack.c.l.bf16 %v26_v21 }
   0x9   :  { %v32_v35 = vld [vmem:[%s1050_s0 + $0xf] sm:$0x1]  ;;  %v91_v36 = vunpack.c.l.bf16 %v27_v24  ;;  %v92_v37 = vunpack.c.l.bf16 %v28_v25  ;;  %v93_v38 = vunpack.c.l.bf16 %v29_v31  ;;  %v94_v39 = vunpack.c.l.bf16 %v30_v32  ;;  %v33_v40 = vld [vmem:[%s1050_s0 + $0x10] sm:$0x1]  ;;  %v34_v41 = vld [vmem:[%s1050_s0 + $0x11] sm:$0x1] }
   0xa   :  { %v224_v42 = vunpack.c.0.s8 %v223_v28  ;;  %v95_v43 = vunpack.c.l.bf16 %v31_v33  ;;  %v96_v44 = vunpack.c.l.bf16 %v32_v35  ;;  %v254_v45 = vcombine.low %v89_v26, %v90_v34  ;;  %v35_v46 = vld [vmem:[%s1050_s0 + $0x12] sm:$0x1]  ;;  %v36_v47 = vld [vmem:[%s1050_s0 + $0x13] sm:$0x1]  ;;  %v37_v48 = vld [vmem:[%s1050_s0 + $0x14] sm:$0x1] }
   0xb   :  { %v255_v49 = vcombine.low %v91_v36, %v92_v37  ;;  %v271_v50 = vcombine.low %v93_v38, %v94_v39  ;;  %v38_v51 = vld [vmem:[%s1050_s0 + $0x15] sm:$0x1]  ;;  %v39_v52 = vld [vmem:[%s1050_s0 + $0x16] sm:$0x1]  ;;  %v40_v53 = vld [vmem:[%s1050_s0 + $0x17] sm:$0x1]  ;;  %v97_v54 = vunpack.c.l.bf16 %v33_v40  ;;  %v98_v55 = vunpack.c.l.bf16 %v34_v41 }
   0xc   :  { %v850_v56 = vsub.s32 %v224_v42, %v799_v19  ;;  %v272_v57 = vcombine.low %v95_v43, %v96_v44  ;;  %v99_v58 = vunpack.c.l.bf16 %v35_v46  ;;  %v100_v59 = vunpack.c.l.bf16 %v36_v47  ;;  %v41_v17 = vld [vmem:[%s1050_s0 + $0x18] sm:$0x1]  ;;  %v42_v18 = vld [vmem:[%s1050_s0 + $0x19] sm:$0x1]  ;;  %v43_v20 = vld [vmem:[%s1050_s0 + $0x1a] sm:$0x1] }
   0xd   :  { %v101_v60 = vunpack.c.l.bf16 %v37_v48  ;;  %v102_v61 = vunpack.c.l.bf16 %v38_v51  ;;  %v103_v62 = vunpack.c.l.bf16 %v39_v52  ;;  %v104_v63 = vunpack.c.l.bf16 %v40_v53  ;;  %v45_v24 = vld [vmem:[%s1050_s0 + $0x1c] sm:$0x1]  ;;  %v46_v25 = vld [vmem:[%s1050_s0 + $0x1d] sm:$0x1]  ;;  %v47_v28 = vld [vmem:[%s1050_s0 + $0x1e] sm:$0x1] }
   0xe   :  { %v228_v0 = vrot.slane %v220_v22, %v850_v56  ;;  %v235_v1 = vrot.slane %v221_v23, %v850_v56  ;;  %v245_v2 = vrot.slane %v237_v29, %v850_v56  ;;  %v252_v3 = vrot.slane %v238_v30, %v850_v56  ;;  %v44_v23 = vld [vmem:[%s1050_s0 + $0x1b] sm:$0x1]  ;;  %v48_v29 = vld [vmem:[%s1050_s0 + $0x1f] sm:$0x1]  ;;  %v49_v44 = vld [vmem:[%s1050_s0 + $0x20] sm:$0x1] }
   0xf   :  { %v262_v5 = vrot.slane %v254_v45, %v850_v56  ;;  %v269_v6 = vrot.slane %v255_v49, %v850_v56  ;;  %v279_v9 = vrot.slane %v271_v50, %v850_v56  ;;  %v286_v10 = vrot.slane %v272_v57, %v850_v56 }
  0x10   :  { %v236_v7 = vcombine.low %v228_v0, %v235_v1  ;;  %v253_v8 = vcombine.low %v245_v2, %v252_v3  ;;  %v288_v12 = vcombine.low %v97_v54, %v98_v55  ;;  %v289_v13 = vcombine.low %v99_v58, %v100_v59 }
  0x11   :  { %v305_v15 = vcombine.low %v101_v60, %v102_v61  ;;  %v306_v16 = vcombine.low %v103_v62, %v104_v63  ;;  %v270_v21 = vcombine.low %v262_v5, %v269_v6  ;;  %v287_v22 = vcombine.low %v279_v9, %v286_v10 }
  0x12   :  { %v683_v14 = vpack.c.bf16 %v253_v8, %v236_v7  ;;  %v296_v26 = vrot.slane %v288_v12, %v850_v56  ;;  %v303_v27 = vrot.slane %v289_v13, %v850_v56  ;;  %v105_v32 = vunpack.c.l.bf16 %v41_v17 }
  0x13   :  { %v313_v30 = vrot.slane %v305_v15, %v850_v56  ;;  %v320_v31 = vrot.slane %v306_v16, %v850_v56  ;;  %v106_v33 = vunpack.c.l.bf16 %v42_v18  ;;  %v107_v34 = vunpack.c.l.bf16 %v43_v20 }
  0x14   :  { %685 = vmatpush3.bf16.xpose.msk.msra.mxu0 %vm862_vm1, %v683_v14  ;;  %v108_v35 = vunpack.c.l.bf16 %v44_v23  ;;  %v109_v36 = vunpack.c.l.bf16 %v45_v24  ;;  %v110_v37 = vunpack.c.l.bf16 %v46_v25  ;;  %v687_v38 = vpack.c.bf16 %v287_v22, %v270_v21 }
  0x15   :  { %686 = vmatprep.subr.bf16.mxu0 %v745_v4  ;;  %v111_v39 = vunpack.c.l.bf16 %v47_v28  ;;  %v112_v40 = vunpack.c.l.bf16 %v48_v29  ;;  %v304_v41 = vcombine.low %v296_v26, %v303_v27  ;;  %v321_v42 = vcombine.low %v313_v30, %v320_v31 }
  0x16   :  { %v322_v43 = vcombine.low %v105_v32, %v106_v33 }
  0x17   :  { %10 = vsyncpa [#allocation4], 0  ;;  %v323_v45 = vcombine.low %v107_v34, %v108_v35  ;;  %v339_v46 = vcombine.low %v109_v36, %v110_v37  ;;  %v50_v47 = vld [vmem:[%s1050_s0 + $0x21] sm:$0x1]  ;;  %v51_v48 = vld [vmem:[%s1050_s0 + $0x22] sm:$0x1]  ;;  %v340_v49 = vcombine.low %v111_v39, %v112_v40  ;;  %v113_v55 = vunpack.c.l.bf16 %v49_v44 }
  0x18   :  { %v52_v50 = vld [vmem:[%s1050_s0 + $0x23] sm:$0x1]  ;;  %v53_v51 = vld [vmem:[%s1050_s0 + $0x24] sm:$0x1]  ;;  %v54_v52 = vld [vmem:[%s1050_s0 + $0x25] sm:$0x1]  ;;  %v691_v57 = vpack.c.bf16 %v321_v42, %v304_v41  ;;  %v330_v58 = vrot.slane %v322_v43, %v850_v56  ;;  %v114_v59 = vunpack.c.l.bf16 %v50_v47  ;;  %v115_v60 = vunpack.c.l.bf16 %v51_v48 }
  0x19   :  { %v55_v53 = vld [vmem:[%s1050_s0 + $0x26] sm:$0x1]  ;;  %v56_v54 = vld [vmem:[%s1050_s0 + $0x27] sm:$0x1]  ;;  %v337_v61 = vrot.slane %v323_v45, %v850_v56  ;;  %v347_v62 = vrot.slane %v339_v46, %v850_v56  ;;  %v116_v63 = vunpack.c.l.bf16 %v52_v50  ;;  %v117_v0 = vunpack.c.l.bf16 %v53_v51  ;;  %v57_v6 = vld [vmem:[%s1050_s0 + $0x28] sm:$0x1] }
  0x1a   :  { %v354_v1 = vrot.slane %v340_v49, %v850_v56  ;;  %v118_v2 = vunpack.c.l.bf16 %v54_v52  ;;  %v119_v3 = vunpack.c.l.bf16 %v55_v53  ;;  %v120_v5 = vunpack.c.l.bf16 %v56_v54  ;;  %v58_v7 = vld [vmem:[%s1050_s0 + $0x29] sm:$0x1]  ;;  %v59_v8 = vld [vmem:[%s1050_s0 + $0x2a] sm:$0x1]  ;;  %v60_v12 = vld [vmem:[%s1050_s0 + $0x2b] sm:$0x1] }
  0x1b   :  { %v338_v9 = vcombine.low %v330_v58, %v337_v61  ;;  %v356_v10 = vcombine.low %v113_v55, %v114_v59  ;;  %v61_v13 = vld [vmem:[%s1050_s0 + $0x2c] sm:$0x1]  ;;  %v62_v14 = vld [vmem:[%s1050_s0 + $0x2d] sm:$0x1]  ;;  %v357_v16 = vcombine.low %v115_v60, %v116_v63  ;;  %v63_v20 = vld [vmem:[%s1050_s0 + $0x2e] sm:$0x1]  ;;  %v121_v22 = vunpack.c.l.bf16 %v57_v6 }
  0x1c   :  { %689 = vmatpush3.bf16.xpose.msk.msra.mxu0 %vm862_vm1, %v687_v38  ;;  %v355_v15 = vcombine.low %v347_v62, %v354_v1  ;;  %v373_v17 = vcombine.low %v117_v0, %v118_v2  ;;  %v374_v18 = vcombine.low %v119_v3, %v120_v5  ;;  %v64_v21 = vld [vmem:[%s1050_s0 + $0x2f] sm:$0x1]  ;;  %v122_v23 = vunpack.c.l.bf16 %v58_v7  ;;  %v65_v36 = vld [vmem:[%s1050_s0 + $0x30] sm:$0x1]  ;;  %v146_v37 = vld [vmem:[#allocation2] sm:$0x1] }
  0x1d   :  { %690 = vmatprep.subr.bf16.mxu0 %v745_v4  ;;  %v123_v24 = vunpack.c.l.bf16 %v59_v8  ;;  %v124_v25 = vunpack.c.l.bf16 %v60_v12  ;;  %v125_v26 = vunpack.c.l.bf16 %v61_v13  ;;  %v126_v27 = vunpack.c.l.bf16 %v62_v14  ;;  %v66_v40 = vld [vmem:[%s1050_s0 + $0x31] sm:$0x1]  ;;  %v67_v41 = vld [vmem:[%s1050_s0 + $0x32] sm:$0x1]  ;;  %v68_v43 = vld [vmem:[%s1050_s0 + $0x33] sm:$0x1] }
  0x1e   :  { %v364_v28 = vrot.slane %v356_v10, %v850_v56  ;;  %v127_v29 = vunpack.c.l.bf16 %v63_v20  ;;  %v128_v30 = vunpack.c.l.bf16 %v64_v21  ;;  %v695_v31 = vpack.c.bf16 %v355_v15, %v338_v9  ;;  %v69_v44 = vld [vmem:[%s1050_s0 + $0x34] sm:$0x1]  ;;  %v70_v49 = vld [vmem:[%s1050_s0 + $0x35] sm:$0x1]  ;;  %v71_v50 = vld [vmem:[%s1050_s0 + $0x36] sm:$0x1] }
  0x1f   :  { %v371_v32 = vrot.slane %v357_v16, %v850_v56  ;;  %v381_v33 = vrot.slane %v373_v17, %v850_v56  ;;  %v388_v34 = vrot.slane %v374_v18, %v850_v56  ;;  %v390_v35 = vcombine.low %v121_v22, %v122_v23  ;;  %v72_v51 = vld [vmem:[%s1050_s0 + $0x37] sm:$0x1]  ;;  %v73_v5 = vld [vmem:[%s1050_s0 + $0x38] sm:$0x1]  ;;  %v74_v10 = vld [vmem:[%s1050_s0 + $0x39] sm:$0x1] }
  0x20   :  { %v391_v38 = vcombine.low %v123_v24, %v124_v25  ;;  %v407_v39 = vcombine.low %v125_v26, %v126_v27  ;;  %v408_v42 = vcombine.low %v127_v29, %v128_v30  ;;  %vm747_vm2 = vmmov 0   ;;  %v75_v12 = vld [vmem:[%s1050_s0 + $0x3a] sm:$0x1]  ;;  %v76_v13 = vld [vmem:[%s1050_s0 + $0x3b] sm:$0x1]  ;;  %s750_s30 = smov [#allocation3]  }
  0x21   :  { %v748_v45 = vmov 0.0   ;;  %v749_v46 = vmov 0   ;;  %v372_v47 = vcombine.low %v364_v28, %v371_v32  ;;  %v389_v48 = vcombine.low %v381_v33, %v388_v34  ;;  %v77_v14 = vld [vmem:[%s1050_s0 + $0x3c] sm:$0x1]  ;;  %v78_v15 = vld [vmem:[%s1050_s0 + $0x3d] sm:$0x1] }
  0x22   :  { %679 = vmatprep.mubr.msk.f32.mxu0 %vm747_vm2, %v748_v45  ;;  %720 = vset.pattern.permute.xlu0 %v749_v46  ;;  %v398_v52 = vrot.slane %v390_v35, %v850_v56  ;;  %v129_v53 = vunpack.c.l.bf16 %v65_v36  ;;  %v130_v54 = vunpack.c.l.bf16 %v66_v40  ;;  %v131_v55 = vunpack.c.l.bf16 %v67_v41  ;;  %v79_v16 = vld [vmem:[%s1050_s0 + $0x3e] sm:$0x1]  ;;  %v80_v17 = vld [vmem:[%s1050_s0 + $0x3f] sm:$0x1]  ;;  %v145_v46 = vld [vmem:[%s1051_s1] sm:$0x1] }
  0x23   :  { %149 = vperm.xlu0 %720, %v146_v37   ;;  %v415_v58 = vrot.slane %v407_v39, %v850_v56  ;;  %v132_v59 = vunpack.c.l.bf16 %v68_v43  ;;  %v133_v60 = vunpack.c.l.bf16 %v69_v44  ;;  %v422_v61 = vrot.slane %v408_v42, %v850_v56  ;;  %s605_s4 = sshll.u32 %s750_s30, 4  ;;  %s606_s4 = int_to_ptr.vmem [resolvable:$true] %s605_s4 }
  0x24   :  { %693 = vmatpush3.bf16.xpose.msk.msra.mxu0 %vm862_vm1, %v691_v57  ;;  %v405_v57 = vrot.slane %v391_v38, %v850_v56  ;;  %v134_v62 = vunpack.c.l.bf16 %v70_v49  ;;  %v135_v63 = vunpack.c.l.bf16 %v71_v50  ;;  %v136_v0 = vunpack.c.l.bf16 %v72_v51  ;;  %s721_s5 = scalar_lea.vmem %s606_s4, 16  ;;  %s725_s6 = scalar_lea.vmem %s606_s4, 32 }
  0x25   :  { %694 = vmatprep.subr.bf16.mxu0 %v745_v4  ;;  %v699_v1 = vpack.c.bf16 %v389_v48, %v372_v47  ;;  %v424_v2 = vcombine.low %v129_v53, %v130_v54  ;;  %v425_v3 = vcombine.low %v131_v55, %v132_v59  ;;  %v423_v7 = vcombine.low %v415_v58, %v422_v61  ;;  %p722_p0 = scmp.ne.s32.totalorder %s606_s4, %s721_s5  ;;  %p726_p1 = scmp.lt.s32.totalorder %s606_s4, %s606_s4 }
  0x26   :  { %v406_v6 = vcombine.low %v398_v52, %v405_v57  ;;  %v441_v8 = vcombine.low %v133_v60, %v134_v62  ;;  %v442_v9 = vcombine.low %v135_v63, %v136_v0  ;;  %v137_v18 = vunpack.c.l.bf16 %v73_v5  ;;  %p727_p2 = scmp.lt.s32.totalorder %s725_s6, %s721_s5 }
  0x27   :  { %v432_v20 = vrot.slane %v424_v2, %v850_v56  ;;  %v439_v21 = vrot.slane %v425_v3, %v850_v56  ;;  %v138_v22 = vunpack.c.l.bf16 %v74_v10  ;;  %v139_v23 = vunpack.c.l.bf16 %v75_v12 }
  0x28   :  { %v703_v24 = vpack.c.bf16 %v423_v7, %v406_v6  ;;  %v449_v25 = vrot.slane %v441_v8, %v850_v56  ;;  %v456_v26 = vrot.slane %v442_v9, %v850_v56  ;;  %v140_v27 = vunpack.c.l.bf16 %v76_v13  ;;  %p728_p3 = por %p727_p2, %p726_p1 }
  0x29   :  { %v141_v28 = vunpack.c.l.bf16 %v77_v14  ;;  %v142_v29 = vunpack.c.l.bf16 %v78_v15  ;;  %v143_v30 = vunpack.c.l.bf16 %v79_v16  ;;  %v440_v32 = vcombine.low %v432_v20, %v439_v21 }
  0x2a   :  { %v458_v33 = vcombine.low %v137_v18, %v138_v22  ;;  %v457_v34 = vcombine.low %v449_v25, %v456_v26  ;;  %v459_v35 = vcombine.low %v139_v23, %v140_v27  ;;  %v154_v47 = vsub.s32 0, %v799_v19  ;;  %p729_p4 = pnand %p728_p3, %p722_p0 }
  0x2b   :  { %v475_v36 = vcombine.low %v141_v28, %v142_v29 }
  0x2c   :  { %697 = vmatpush3.bf16.xpose.msk.msra.mxu0 %vm862_vm1, %v695_v31  ;;  %v144_v31 = vunpack.c.l.bf16 %v80_v17  ;;  %v466_v38 = vrot.slane %v458_v33, %v850_v56  ;;  %v707_v39 = vpack.c.bf16 %v457_v34, %v440_v32  ;;  %v473_v40 = vrot.slane %v459_v35, %v850_v56 }
  0x2d   :  { %698 = vmatprep.subr.bf16.mxu0 %v745_v4  ;;  %v483_v41 = vrot.slane %v475_v36, %v850_v56 }
  0x2e   :  { %v476_v37 = vcombine.low %v143_v30, %v144_v31  ;;  %v474_v43 = vcombine.low %v466_v38, %v473_v40 }
  0x30   :  { %v490_v42 = vrot.slane %v476_v37, %v850_v56 }
  0x32   :  { %v491_v44 = vcombine.low %v483_v41, %v490_v42 }
  0x34   :  { %701 = vmatpush3.bf16.xpose.msk.msra.mxu0 %vm862_vm1, %v699_v1  ;;  %v711_v45 = vpack.c.bf16 %v491_v44, %v474_v43 }
  0x35   :  { %702 = vmatprep.subr.bf16.mxu0 %v745_v4 }
  0x3c   :  { %705 = vmatpush3.bf16.xpose.msk.msra.mxu0 %vm862_vm1, %v703_v24 }
  0x3d   :  { %706 = vmatprep.subr.bf16.mxu0 %v745_v4 }
  0x44   :  { %709 = vmatpush3.bf16.xpose.msk.msra.mxu0 %vm862_vm1, %v707_v39 }
  0x45   :  { %710 = vmatprep.subr.bf16.mxu0 %v745_v4 }
  0x4c   :  { %713 = vmatpush3.bf16.xpose.msk.msra.mxu0 %vm862_vm1, %v711_v45 }
  0x53   :  { %680 = vmatmul.mubr.msk.f32.vlgmr.msra.gmra.mrb[0].mxu0 %vm492_vm0, %v145_v46 }
  0xa2   :  { %v150_v56 = vpop.permute.xlu0 %149 }
  0xa3   :  { %v155_v48 = vrot.slane %v150_v56, %v154_v47 }
 0x126   :  { %v594_v49 = vpop.f32.mrb[0].mxu0 }
 0x127   :  { %v595_v50 = vadd.f32 %v594_v49, %v155_v48  ;;  %v681_v51 = vpop.f32.mrb[1].mxu0 }
 0x129   :  { %598 = vst [vmem:[#allocation3] sm:$0x1] %v595_v50 }
 0x12a   :  { %732 = shalt.err (!%p729_p4)
}
 0x12b   :  { %s733_s8 = scalar_lea.hbm %s1053_s3, 16 }
 0x12c   :  { %p734_p5 = scmp.ne.s32.totalorder %s1053_s3, %s733_s8  ;;  %p737_p6 = scmp.lt.u32.totalorder %s733_s8, %s1053_s3 }
 0x12e   :  { %p739_p7 = pnand %p737_p6, %p734_p5 }
 0x130   :  { %742 = shalt.err (!%p739_p7)
}
 0x131   :  { %608 = dma.vmem_to_hbm [thread:$0]  %s606_s4, 16, %s1053_s3, [#allocation4]  }
 0x132   :  { %743 = dma.done.wait [#allocation4], 16  }
 0x133   :  { %744 = vsyncadd [#allocation4], 4294967280 }
 0x134   :  { %612 = vsyncpa [#allocation4], 1 }

</bundles_post_ra>
